<compile_context>
chip_gen: v6e
topology: v6e:2x2x1
jax: 0.10.0
libtpu: 0.0.40
codegen_flags: <defaults>
</compile_context>

<pallas_src>
from typing import NamedTuple

import jax
import jax.numpy as jnp
from jax import lax
from jax.experimental import pallas as pl
from jax.experimental.pallas import tpu as pltpu


_INV_SQRT2 = 0.7071067811865476  # 1/sqrt(2)
_HAS_BUFFERED = hasattr(pl, "Buffered")


def _round_up(n, m):
    return ((n + m - 1) // m) * m


def _gelu_exact(x):
    # nn.GELU() default is the exact (erf-based) GELU; x is the f32 accumulator.
    return 0.5 * x * (1.0 + lax.erf(x * _INV_SQRT2))


def embedfc_kernel(x_ref, w1_ref, b1_ref, w2_ref, b2_ref, o_ref):
    # x_ref:  (TB, K)
    # w1_ref: (K, N_p)    b1_ref: (1, N_p)
    # w2_ref: (N_p, TN)   b2_ref: (1, TN)
    # o_ref:  (TB, TN)
    h = jnp.dot(x_ref[...], w1_ref[...], preferred_element_type=jnp.float32)
    h = h + b1_ref[...].astype(jnp.float32)
    h = _gelu_exact(h)  # f32 epilogue on the accumulator

    y = jnp.dot(h.astype(w2_ref.dtype), w2_ref[...],
                preferred_element_type=jnp.float32)
    y = y + b2_ref[...].astype(jnp.float32)
    o_ref[...] = y.astype(o_ref.dtype)


class EmbedFCParams(NamedTuple):
    w1: jax.Array       # (K,   N_p)  zero-padded, lane-dense
    b1: jax.Array       # (1,   N_p)
    w2: jax.Array       # (N_p, N_p)
    b2: jax.Array       # (1,   N_p)
    input_dim: int
    emb_dim: int


def prepare_embedfc_params(w1, b1, w2, b2, *, compute_dtype=None):
    """Pad / reshape the Linear parameters ONCE at setup time.

    w1: (input_dim, emb_dim)  b1: (emb_dim,)
    w2: (emb_dim,  emb_dim)   b2: (emb_dim,)
    Padding to a multiple of 128 lanes keeps in-bounds math bit-identical:
    pad cols of W1/b1 give h == 0, GELU(0) == 0, pad rows of W2 contribute 0,
    and padded output columns are sliced off in embed_fc.
    """
    input_dim, emb_dim = w1.shape
    n_p = _round_up(emb_dim, 128)
    pad = n_p - emb_dim
    if compute_dtype is not None:  # optional bf16 streaming (halves HBM bytes)
        w1, b1, w2, b2 = (a.astype(compute_dtype) for a in (w1, b1, w2, b2))
    if pad:
        w1 = jnp.pad(w1, ((0, 0), (0, pad)))
        w2 = jnp.pad(w2, ((0, pad), (0, pad)))
        b1 = jnp.pad(b1, (0, pad))
        b2 = jnp.pad(b2, (0, pad))
    return EmbedFCParams(w1, b1.reshape(1, n_p), w2, b2.reshape(1, n_p),
                         int(input_dim), int(emb_dim))


def _vmem_capacity_bytes():
    try:
        return int(pltpu.get_tpu_info().vmem_capacity_bytes)
    except Exception:
        return 64 << 20  # conservative: v7x has 64 MiB per TensorCore


def embed_fc(x, params: EmbedFCParams, *, block_b=512, core_parallel="auto"):
    """Forward pass of EmbedFC: y = (GELU(x.view(-1,K) @ W1 + b1)) @ W2 + b2."""
    K, emb_dim = params.input_dim, params.emb_dim
    N_p = params.w1.shape[1]

    x2d = x.reshape(-1, K)
    out_dtype = x2d.dtype
    if x2d.dtype != params.w1.dtype:       # match MXU operand dtype to weights
        x2d = x2d.astype(params.w1.dtype)
    B = x2d.shape[0]

    # Balanced batch tiles (waste < 8 rows per tile instead of up to block_b-1).
    n_btiles = max(1, pl.cdiv(B, block_b))
    TB = _round_up(pl.cdiv(B, n_btiles), 8)
    B_p = _round_up(B, TB)
    if B_p != B:
        x2d = jnp.pad(x2d, ((0, B_p - B), (0, 0)))
    grid_b = B_p // TB

    w_item = jnp.dtype(params.w1.dtype).itemsize
    x_item = jnp.dtype(x2d.dtype).itemsize
    o_item = jnp.dtype(out_dtype).itemsize

    vmem_cap = _vmem_capacity_bytes()
    vmem_budget = int(vmem_cap * 0.78)     # ~50 MiB on v7x, ~100 MiB on v5e/v6e

    def _vmem_est(tn, wbuf):
        # wbuf = buffer count for the resident (constant index) weight blocks.
        w2buf = wbuf if tn == N_p else 2   # tiled W2/b2 are pipelined (2 bufs)
        resident = wbuf * (K * N_p + N_p) * w_item
        w2_bytes = w2buf * (N_p * tn + tn) * w_item
        act = 2 * TB * K * x_item + 2 * TB * tn * o_item
        return resident + w2_bytes + act + (4 << 20)  # headroom for Mosaic scratch

    # Column tile for W2: prefer fully resident (TN == N_p); shrink to a
    # 128-multiple divisor of N_p only when resident weights would not fit.
    TN = N_p
    if _vmem_est(N_p, 1) > vmem_budget:
        cands = [d for d in range(N_p - 128, 127, -128) if N_p % d == 0]
        for tn in cands:
            if _vmem_est(tn, 1) <= vmem_budget:
                TN = tn
                break
        else:
            TN = cands[-1] if cands else N_p
    grid_n = N_p // TN

    # Generous limit (computed with 2 weight buffers) so the fallback config
    # still compiles; clamped to the per-generation budget.
    vmem_limit = int(min(max(_vmem_est(TN, 2), 32 << 20), vmem_budget))

    def _run(single_buffer_weights, dim_semantics):
        def resident_spec(shape, imap):
            if single_buffer_weights and _HAS_BUFFERED:
                return pl.BlockSpec(shape, imap, pipeline_mode=pl.Buffered(1))
            return pl.BlockSpec(shape, imap)

        w2_spec = resident_spec if grid_n == 1 else pl.BlockSpec
        in_specs = [
            pl.BlockSpec((TB, K), lambda i, j: (i, 0)),        # x (pipelined)
            resident_spec((K, N_p), lambda i, j: (0, 0)),      # W1 (resident)
            resident_spec((1, N_p), lambda i, j: (0, 0)),      # b1 (resident)
            w2_spec((N_p, TN), lambda i, j: (0, j)),           # W2
            w2_spec((1, TN), lambda i, j: (0, j)),             # b2
        ]
        out_specs = pl.BlockSpec((TB, TN), lambda i, j: (i, j))

        return pl.pallas_call(
            embedfc_kernel,
            out_shape=jax.ShapeDtypeStruct((B_p, N_p), out_dtype),
            grid_spec=pltpu.PrefetchScalarGridSpec(
                num_scalar_prefetch=0,
                grid=(grid_b, grid_n),
                in_specs=in_specs,
                out_specs=out_specs,
            ),
            compiler_params=pltpu.CompilerParams(
                dimension_semantics=dim_semantics,
                vmem_limit_bytes=vmem_limit,
            ),
        )(x2d, params.w1, params.b1, params.w2, params.b2)

    # Config attempts, best first; fall back gracefully if a feature is
    # unsupported on this chip / Mosaic build.
    base_sem = ("parallel", "arbitrary")
    attempts = []
    if core_parallel and grid_b >= 2 and hasattr(pltpu, "CORE_PARALLEL"):
        attempts.append((True, (pltpu.CORE_PARALLEL, "arbitrary")))
    attempts.append((True, base_sem))
    attempts.append((False, base_sem))

    out = None
    last_err = None
    for single_buf, sems in attempts:
        try:
            out = _run(single_buf, sems)
            break
        except Exception as err:  # fall back to the next configuration
            last_err = err
    if out is None:
        raise last_err

    return out[:B, :emb_dim]


def _reference(x, w1, b1, w2, b2, input_dim):
    x2d = x.reshape(-1, input_dim).astype(jnp.float32)
    h = x2d @ w1.astype(jnp.float32) + b1.astype(jnp.float32)
    h = 0.5 * h * (1.0 + lax.erf(h * _INV_SQRT2))
    return h @ w2.astype(jnp.float32) + b2.astype(jnp.float32)


if __name__ == "__main__":
    key = jax.random.PRNGKey(0)
    k_x, k_w1, k_b1, k_w2, k_b2 = jax.random.split(key, 5)

    # Small shapes consistent with the module: a (2, 4, 16) input viewed as
    # (-1, input_dim=16), embedded into emb_dim=32.
    input_dim = 16
    emb_dim = 32
    x = jax.random.normal(k_x, (2, 4, input_dim), dtype=jnp.float32)

    # Deterministic parameter init (uniform ~ PyTorch Linear default scale).
    bound1 = 1.0 / (input_dim ** 0.5)
    bound2 = 1.0 / (emb_dim ** 0.5)
    w1 = jax.random.uniform(k_w1, (input_dim, emb_dim), jnp.float32, -bound1, bound1)
    b1 = jax.random.uniform(k_b1, (emb_dim,), jnp.float32, -bound1, bound1)
    w2 = jax.random.uniform(k_w2, (emb_dim, emb_dim), jnp.float32, -bound2, bound2)
    b2 = jax.random.uniform(k_b2, (emb_dim,), jnp.float32, -bound2, bound2)

    params = prepare_embedfc_params(w1, b1, w2, b2)  # pad/reshape once at setup
    out = embed_fc(x, params)
    out = jax.block_until_ready(out)

    ref = _reference(x, w1, b1, w2, b2, input_dim)
    assert out.shape == (8, emb_dim), out.shape
    assert jnp.allclose(out, ref, atol=1e-5, rtol=1e-5), "mismatch vs reference"

    print("KERNEL_OK")
</pallas_src>

<mosaic_0001>
module attributes {stable_mosaic.version = 11 : i64} {
  func.func @embedfc_kernel(%arg0: i32, %arg1: i32, %arg2: memref<8x16xf32, #tpu.memory_space<vmem>>, %arg3: memref<16x128xf32, #tpu.memory_space<vmem>>, %arg4: memref<1x128xf32, #tpu.memory_space<vmem>>, %arg5: memref<128x128xf32, #tpu.memory_space<vmem>>, %arg6: memref<1x128xf32, #tpu.memory_space<vmem>>, %arg7: memref<8x128xf32, #tpu.memory_space<vmem>>) attributes {dimension_semantics = [#tpu.dimension_semantics<parallel>, #tpu.dimension_semantics<arbitrary>], iteration_bounds = array<i64: 1, 1>, scalar_prefetch = 0 : i64, scratch_operands = 0 : i64, tpu.core_type = #tpu.core_type<tc>, window_params = [{transform_indices = @transform_0, window_bounds = array<i64: 8, 16>}, {pipeline_mode = #tpu.pipeline_mode<synchronous>, transform_indices = @transform_1, window_bounds = array<i64: 16, 128>}, {pipeline_mode = #tpu.pipeline_mode<synchronous>, transform_indices = @transform_2, window_bounds = array<i64: 1, 128>}, {pipeline_mode = #tpu.pipeline_mode<synchronous>, transform_indices = @transform_3, window_bounds = array<i64: 128, 128>}, {pipeline_mode = #tpu.pipeline_mode<synchronous>, transform_indices = @transform_4, window_bounds = array<i64: 1, 128>}, {transform_indices = @transform_5, window_bounds = array<i64: 8, 128>}]} {
    %c0 = arith.constant 0 : index
    %c0_0 = arith.constant 0 : index
    %0 = vector.load %arg2[%c0, %c0_0] : memref<8x16xf32, #tpu.memory_space<vmem>>, vector<8x16xf32>
    %c0_1 = arith.constant 0 : index
    %c0_2 = arith.constant 0 : index
    %1 = vector.load %arg3[%c0_1, %c0_2] : memref<16x128xf32, #tpu.memory_space<vmem>>, vector<16x128xf32>
    %cst = arith.constant dense<0.000000e+00> : vector<8x128xf32>
    %2 = tpu.matmul %0, %1, %cst {dimension_numbers = #tpu.dot_dimension_numbers<[1], [0], [0], [1], [0, 0, 1, 1], [], []>} : vector<8x16xf32>, vector<16x128xf32>, vector<8x128xf32> -> vector<8x128xf32>
    %c0_3 = arith.constant 0 : index
    %c0_4 = arith.constant 0 : index
    %3 = vector.load %arg4[%c0_3, %c0_4] : memref<1x128xf32, #tpu.memory_space<vmem>>, vector<1x128xf32>
    %4 = vector.broadcast %3 : vector<1x128xf32> to vector<8x128xf32>
    %5 = arith.addf %2, %4 : vector<8x128xf32>
    %cst_5 = arith.constant 5.000000e-01 : f32
    %6 = vector.broadcast %cst_5 : f32 to vector<8x128xf32>
    %7 = arith.mulf %6, %5 : vector<8x128xf32>
    %cst_6 = arith.constant 0.707106769 : f32
    %8 = vector.broadcast %cst_6 : f32 to vector<8x128xf32>
    %9 = arith.mulf %5, %8 : vector<8x128xf32>
    %10 = math.erf %9 : vector<8x128xf32>
    %cst_7 = arith.constant 1.000000e+00 : f32
    %11 = vector.broadcast %cst_7 : f32 to vector<8x128xf32>
    %12 = arith.addf %11, %10 : vector<8x128xf32>
    %13 = arith.mulf %7, %12 : vector<8x128xf32>
    %c0_8 = arith.constant 0 : index
    %c0_9 = arith.constant 0 : index
    %14 = vector.load %arg5[%c0_8, %c0_9] : memref<128x128xf32, #tpu.memory_space<vmem>>, vector<128x128xf32>
    %cst_10 = arith.constant dense<0.000000e+00> : vector<8x128xf32>
    %15 = tpu.matmul %13, %14, %cst_10 {dimension_numbers = #tpu.dot_dimension_numbers<[1], [0], [0], [1], [0, 0, 1, 1], [], []>} : vector<8x128xf32>, vector<128x128xf32>, vector<8x128xf32> -> vector<8x128xf32>
    %c0_11 = arith.constant 0 : index
    %c0_12 = arith.constant 0 : index
    %16 = vector.load %arg6[%c0_11, %c0_12] : memref<1x128xf32, #tpu.memory_space<vmem>>, vector<1x128xf32>
    %17 = vector.broadcast %16 : vector<1x128xf32> to vector<8x128xf32>
    %18 = arith.addf %15, %17 : vector<8x128xf32>
    %c0_13 = arith.constant 0 : index
    %c0_14 = arith.constant 0 : index
    %19 = vector.load %arg7[%c0_13, %c0_14] : memref<8x128xf32, #tpu.memory_space<vmem>>, vector<8x128xf32>
    tpu.vector_store %arg7[%c0_13, %c0_14], %18 {strides = array<i32>} : memref<8x128xf32, #tpu.memory_space<vmem>>, vector<8x128xf32>,
    return
  }
  func.func @transform_0(%arg0: i32, %arg1: i32) -> (i32, i32) {
    %c0_i32 = arith.constant 0 : i32
    %c0_i32_0 = arith.constant 0 : i32
    return %arg0, %c0_i32 : i32, i32
  }
  func.func @transform_1(%arg0: i32, %arg1: i32) -> (i32, i32) {
    %c0_i32 = arith.constant 0 : i32
    %c0_i32_0 = arith.constant 0 : i32
    %c0_i32_1 = arith.constant 0 : i32
    return %c0_i32, %c0_i32_0 : i32, i32
  }
  func.func @transform_2(%arg0: i32, %arg1: i32) -> (i32, i32) {
    %c0_i32 = arith.constant 0 : i32
    %c0_i32_0 = arith.constant 0 : i32
    %c0_i32_1 = arith.constant 0 : i32
    return %c0_i32, %c0_i32_0 : i32, i32
  }
  func.func @transform_3(%arg0: i32, %arg1: i32) -> (i32, i32) {
    %c0_i32 = arith.constant 0 : i32
    %c0_i32_0 = arith.constant 0 : i32
    return %c0_i32, %arg1 : i32, i32
  }
  func.func @transform_4(%arg0: i32, %arg1: i32) -> (i32, i32) {
    %c0_i32 = arith.constant 0 : i32
    %c0_i32_0 = arith.constant 0 : i32
    return %c0_i32, %arg1 : i32, i32
  }
  func.func @transform_5(%arg0: i32, %arg1: i32) -> (i32, i32) {
    %c0_i32 = arith.constant 0 : i32
    return %arg0, %arg1 : i32, i32
  }
}

module attributes {stable_mosaic.version = 11 : i64} {
  func.func @embedfc_kernel(%arg0: i32, %arg1: i32, %arg2: memref<8x16xf32, #tpu.memory_space<vmem>>, %arg3: memref<16x128xf32, #tpu.memory_space<vmem>>, %arg4: memref<1x128xf32, #tpu.memory_space<vmem>>, %arg5: memref<128x128xf32, #tpu.memory_space<vmem>>, %arg6: memref<1x128xf32, #tpu.memory_space<vmem>>, %arg7: memref<8x128xf32, #tpu.memory_space<vmem>>) attributes {dimension_semantics = [#tpu.dimension_semantics<parallel>, #tpu.dimension_semantics<arbitrary>], iteration_bounds = array<i64: 1, 1>, scalar_prefetch = 0 : i64, scratch_operands = 0 : i64, tpu.core_type = #tpu.core_type<tc>, window_params = [{transform_indices = @transform_0, window_bounds = array<i64: 8, 16>}, {pipeline_mode = #tpu.pipeline_mode<synchronous>, transform_indices = @transform_1, window_bounds = array<i64: 16, 128>}, {pipeline_mode = #tpu.pipeline_mode<synchronous>, transform_indices = @transform_2, window_bounds = array<i64: 1, 128>}, {transform_indices = @transform_3, window_bounds = array<i64: 128, 128>}, {transform_indices = @transform_4, window_bounds = array<i64: 1, 128>}, {transform_indices = @transform_5, window_bounds = array<i64: 8, 128>}]} {
    %c0 = arith.constant 0 : index
    %c0_0 = arith.constant 0 : index
    %0 = vector.load %arg2[%c0, %c0_0] : memref<8x16xf32, #tpu.memory_space<vmem>>, vector<8x16xf32>
    %c0_1 = arith.constant 0 : index
    %c0_2 = arith.constant 0 : index
    %1 = vector.load %arg3[%c0_1, %c0_2] : memref<16x128xf32, #tpu.memory_space<vmem>>, vector<16x128xf32>
    %cst = arith.constant dense<0.000000e+00> : vector<8x128xf32>
    %2 = tpu.matmul %0, %1, %cst {dimension_numbers = #tpu.dot_dimension_numbers<[1], [0], [0], [1], [0, 0, 1, 1], [], []>} : vector<8x16xf32>, vector<16x128xf32>, vector<8x128xf32> -> vector<8x128xf32>
    %c0_3 = arith.constant 0 : index
    %c0_4 = arith.constant 0 : index
    %3 = vector.load %arg4[%c0_3, %c0_4] : memref<1x128xf32, #tpu.memory_space<vmem>>, vector<1x128xf32>
    %4 = vector.broadcast %3 : vector<1x128xf32> to vector<8x128xf32>
    %5 = arith.addf %2, %4 : vector<8x128xf32>
    %cst_5 = arith.constant 5.000000e-01 : f32
    %6 = vector.broadcast %cst_5 : f32 to vector<8x128xf32>
    %7 = arith.mulf %6, %5 : vector<8x128xf32>
    %cst_6 = arith.constant 0.707106769 : f32
    %8 = vector.broadcast %cst_6 : f32 to vector<8x128xf32>
    %9 = arith.mulf %5, %8 : vector<8x128xf32>
    %10 = math.erf %9 : vector<8x128xf32>
    %cst_7 = arith.constant 1.000000e+00 : f32
    %11 = vector.broadcast %cst_7 : f32 to vector<8x128xf32>
    %12 = arith.addf %11, %10 : vector<8x128xf32>
    %13 = arith.mulf %7, %12 : vector<8x128xf32>
    %c0_8 = arith.constant 0 : index
    %c0_9 = arith.constant 0 : index
    %14 = vector.load %arg5[%c0_8, %c0_9] : memref<128x128xf32, #tpu.memory_space<vmem>>, vector<128x128xf32>
    %cst_10 = arith.constant dense<0.000000e+00> : vector<8x128xf32>
    %15 = tpu.matmul %13, %14, %cst_10 {dimension_numbers = #tpu.dot_dimension_numbers<[1], [0], [0], [1], [0, 0, 1, 1], [], []>} : vector<8x128xf32>, vector<128x128xf32>, vector<8x128xf32> -> vector<8x128xf32>
    %c0_11 = arith.constant 0 : index
    %c0_12 = arith.constant 0 : index
    %16 = vector.load %arg6[%c0_11, %c0_12] : memref<1x128xf32, #tpu.memory_space<vmem>>, vector<1x128xf32>
    %17 = vector.broadcast %16 : vector<1x128xf32> to vector<8x128xf32>
    %18 = arith.addf %15, %17 : vector<8x128xf32>
    %c0_13 = arith.constant 0 : index
    %c0_14 = arith.constant 0 : index
    %19 = vector.load %arg7[%c0_13, %c0_14] : memref<8x128xf32, #tpu.memory_space<vmem>>, vector<8x128xf32>
    tpu.vector_store %arg7[%c0_13, %c0_14], %18 {strides = array<i32>} : memref<8x128xf32, #tpu.memory_space<vmem>>, vector<8x128xf32>,
    return
  }
  func.func @transform_0(%arg0: i32, %arg1: i32) -> (i32, i32) {
    %c0_i32 = arith.constant 0 : i32
    %c0_i32_0 = arith.constant 0 : i32
    return %arg0, %c0_i32 : i32, i32
  }
  func.func @transform_1(%arg0: i32, %arg1: i32) -> (i32, i32) {
    %c0_i32 = arith.constant 0 : i32
    %c0_i32_0 = arith.constant 0 : i32
    %c0_i32_1 = arith.constant 0 : i32
    return %c0_i32, %c0_i32_0 : i32, i32
  }
  func.func @transform_2(%arg0: i32, %arg1: i32) -> (i32, i32) {
    %c0_i32 = arith.constant 0 : i32
    %c0_i32_0 = arith.constant 0 : i32
    %c0_i32_1 = arith.constant 0 : i32
    return %c0_i32, %c0_i32_0 : i32, i32
  }
  func.func @transform_3(%arg0: i32, %arg1: i32) -> (i32, i32) {
    %c0_i32 = arith.constant 0 : i32
    %c0_i32_0 = arith.constant 0 : i32
    return %c0_i32, %arg1 : i32, i32
  }
  func.func @transform_4(%arg0: i32, %arg1: i32) -> (i32, i32) {
    %c0_i32 = arith.constant 0 : i32
    %c0_i32_0 = arith.constant 0 : i32
    return %c0_i32, %arg1 : i32, i32
  }
  func.func @transform_5(%arg0: i32, %arg1: i32) -> (i32, i32) {
    %c0_i32 = arith.constant 0 : i32
    return %arg0, %arg1 : i32, i32
  }
}

</mosaic_0001>

<bundles_post_ra>
// kernel: tpu_custom_call.1
= control target key start
LH: loop header
LB: loop body
LE: loop exit
PB: predicated region body
PF: predicated region fallthrough
CT: control target
= control target key end

     0   :  { %10 = vsyncpa [#allocation3], 0  ;;  %s476_s0 = inlined_call_operand.hbm [shape: f32[8,16], index: 0, kind: input, shape index: {}]   ;;  %s477_s1 = inlined_call_operand.hbm [shape: f32[16,128], index: 1, kind: input, shape index: {}]   ;;  %s478_s2 = inlined_call_operand.vmem [shape: f32[1,128], index: 2, kind: input, shape index: {}]   ;;  %s479_s3 = inlined_call_operand.hbm [shape: f32[128,128], index: 3, kind: input, shape index: {}]   ;;  %s480_s4 = inlined_call_operand.vmem [shape: f32[1,128], index: 4, kind: input, shape index: {}]   ;;  %s481_s5 = inlined_call_operand.hbm [shape: f32[8,128], index: 5, kind: output, shape index: {}]  }
   0x1   :  { %11 = vsyncpa [#allocation6], 0 }
   0x2   :  { %12 = vsyncpa [#allocation4], 0  ;;  %s420_s18 = smov [#allocation5]  }
   0x3   :  { %s28_s19 = sshll.u32 %s420_s18, 4  ;;  %s29_s19 = int_to_ptr.vmem [resolvable:$true] %s28_s19 }
   0x4   :  { %s342_s20 = scalar_lea.vmem %s29_s19, 256  ;;  %p347_p1 = scmp.lt.s32.totalorder %s29_s19, %s29_s19 }
   0x5   :  { %p343_p0 = scmp.ne.s32.totalorder %s29_s19, %s342_s20  ;;  %p348_p2 = scmp.lt.s32.totalorder %s342_s20, %s342_s20 }
   0x7   :  { %p349_p3 = por %p348_p2, %p347_p1 }
   0x9   :  { %p350_p4 = pnand %p349_p3, %p343_p0 }
   0xb   :  { %353 = shalt.err (!%p350_p4)
}
   0xc   :  { %s421_s21 = smov 128   ;;  %s422_s22 = smov 8  }
   0xd   :  { %34 = dma.hbm_to_vmem [thread:$0]  %s477_s1, 256, %s29_s19, [#allocation6], %s421_s21, %s421_s21, %s422_s22  }
   0xe   :  { %s423_s25 = smov [#allocation2]   ;;  %s424_s27 = smov [#allocation7]  }
   0xf   :  { %s19_s26 = sshll.u32 %s423_s25, 4  ;;  %s42_s28 = sshll.u32 %s424_s27, 4  ;;  %s20_s26 = int_to_ptr.vmem [resolvable:$true] %s19_s26  ;;  %s43_s28 = int_to_ptr.vmem [resolvable:$true] %s42_s28 }
  0x10   :  { %s362_s29 = scalar_lea.vmem %s20_s26, 128  ;;  %p367_p6 = scmp.lt.s32.totalorder %s20_s26, %s20_s26 }
  0x11   :  { %p363_p5 = scmp.ne.s32.totalorder %s20_s26, %s362_s29  ;;  %p368_p7 = scmp.lt.s32.totalorder %s362_s29, %s362_s29 }
  0x13   :  { %p369_p8 = por %p368_p7, %p367_p6 }
  0x15   :  { %p370_p9 = pnand %p369_p8, %p363_p5 }
  0x17   :  { %373 = shalt.err (!%p370_p9)
}
  0x18   :  { %22 = dma.hbm_to_vmem [thread:$0]  %s476_s0, 128, %s20_s26, [#allocation3]  }
  0x19   :  { %s382_s7 = scalar_lea.vmem %s43_s28, 2048  ;;  %p387_p11 = scmp.lt.s32.totalorder %s43_s28, %s43_s28 }
  0x1a   :  { %p383_p10 = scmp.ne.s32.totalorder %s43_s28, %s382_s7  ;;  %p388_p12 = scmp.lt.s32.totalorder %s382_s7, %s382_s7 }
  0x1c   :  { %p389_p13 = por %p388_p12, %p387_p11 }
  0x1e   :  { %p390_p0 = pnand %p389_p13, %p383_p10 }
  0x20   :  { %393 = shalt.err (!%p390_p0)
}
  0x21   :  { %48 = dma.hbm_to_vmem [thread:$0]  %s479_s3, 2048, %s43_s28, [#allocation6], %s421_s21, %s421_s21, %s422_s22  }
  0x22   :  { %414 = dma.done.wait [#allocation3], 128  }
  0x23   :  { %415 = vsyncadd [#allocation3], 4294967168 }
  0x24   :  { %416 = dma.done.wait [#allocation6], 2304  }
  0x25   :  { %417 = vsyncadd [#allocation6], 4294964992  ;;  %v425_v0 = vmov 0.0   ;;  %vm426_vm0 = vmmov 0   ;;  %v62_v1 = vld [vmem:[#allocation5 + $0x8] sm:$0xff]  ;;  %v61_v2 = vld [vmem:[#allocation5] sm:$0xff] }
  0x26   :  { %282 = vmatprep.subr.mxu0 %v425_v0  ;;  %286 = vmatprep.mubr.msk.f32.mxu0 %vm426_vm0, %v425_v0  ;;  %v60_v3 = vld [vmem:[#allocation2] sm:$0xff]  ;;  %vm70_vm1 = vcmask 130048   ;;  %v164_v4 = vld [vmem:[#allocation7 + $0x78] sm:$0xff]  ;;  %v163_v5 = vld [vmem:[#allocation7 + $0x70] sm:$0xff]  ;;  %s427_s11 = smov [#allocation8]  }
  0x27   :  { %289 = vmatprep.subr.mxu1 %v425_v0  ;;  %321 = vmatprep.mubr.msk.f32.mxu1 %vm426_vm0, %v425_v0  ;;  %v162_v6 = vld [vmem:[#allocation7 + $0x68] sm:$0xff]  ;;  %v161_v7 = vld [vmem:[#allocation7 + $0x60] sm:$0xff]  ;;  %v160_v8 = vld [vmem:[#allocation7 + $0x58] sm:$0xff]  ;;  %s249_s12 = sshll.u32 %s427_s11, 4  ;;  %s250_s12 = int_to_ptr.vmem [resolvable:$true] %s249_s12 }
  0x28   :  { %283 = vmatpush3.msra.mxu0 %v62_v1  ;;  %290 = vmatpush3.msra.mxu1 %v164_v4  ;;  %v159_v9 = vld [vmem:[#allocation7 + $0x50] sm:$0xff]  ;;  %v158_v10 = vld [vmem:[#allocation7 + $0x48] sm:$0xff]  ;;  %v157_v11 = vld [vmem:[#allocation7 + $0x40] sm:$0xff]  ;;  %p399_p2 = scmp.lt.s32.totalorder %s250_s12, %s250_s12 }
  0x29   :  { %284 = vmatprep.subr.mxu0 %v425_v0  ;;  %291 = vmatprep.subr.mxu1 %v425_v0  ;;  %v156_v12 = vld [vmem:[#allocation7 + $0x38] sm:$0xff]  ;;  %v155_v13 = vld [vmem:[#allocation7 + $0x30] sm:$0xff]  ;;  %v154_v14 = vld [vmem:[#allocation7 + $0x28] sm:$0xff] }
  0x2a   :  { %285 = vmatpush3.msra.mxu0 %v61_v2  ;;  %292 = vmatpush3.msra.mxu1 %v163_v5  ;;  %v153_v15 = vld [vmem:[#allocation7 + $0x20] sm:$0xff]  ;;  %v152_v16 = vld [vmem:[#allocation7 + $0x18] sm:$0xff]  ;;  %v151_v17 = vld [vmem:[#allocation7 + $0x10] sm:$0xff] }
  0x2b   :  { %287 = vmatmul.mubr.msk.f32.vlgmr.msra.gmra.mxu0 %vm70_vm1, %v60_v3  ;;  %293 = vmatprep.subr.mxu1 %v425_v0  ;;  %v150_v18 = vld [vmem:[#allocation7 + $0x8] sm:$0xff]  ;;  %v149_v19 = vld [vmem:[#allocation7] sm:$0xff] }
  0x2c   :  { %294 = vmatpush3.msra.mxu1 %v162_v6  ;;  %v259_v20 = vld [vmem:[%s478_s2] ss:$0 sm:$0xff]  ;;  %s394_s2 = scalar_lea.vmem %s250_s12, 128 }
  0x2d   :  { %295 = vmatprep.subr.mxu1 %v425_v0  ;;  %v261_v29 = vld [vmem:[%s480_s4] ss:$0 sm:$0xff]  ;;  %p395_p1 = scmp.ne.s32.totalorder %s250_s12, %s394_s2  ;;  %p400_p3 = scmp.lt.s32.totalorder %s394_s2, %s394_s2 }
  0x2e   :  { %296 = vmatpush3.msra.mxu1 %v161_v7 }
  0x2f   :  { %297 = vmatprep.subr.mxu1 %v425_v0  ;;  %p401_p4 = por %p400_p3, %p399_p2 }
  0x30   :  { %298 = vmatpush3.msra.mxu1 %v160_v8 }
  0x31   :  { %299 = vmatprep.subr.mxu1 %v425_v0  ;;  %p402_p5 = pnand %p401_p4, %p395_p1 }
  0x32   :  { %300 = vmatpush3.msra.mxu1 %v159_v9 }
  0x33   :  { %301 = vmatprep.subr.mxu1 %v425_v0 }
  0x34   :  { %302 = vmatpush3.msra.mxu1 %v158_v10 }
  0x35   :  { %303 = vmatprep.subr.mxu1 %v425_v0 }
  0x36   :  { %304 = vmatpush3.msra.mxu1 %v157_v11 }
  0x37   :  { %305 = vmatprep.subr.mxu1 %v425_v0 }
  0x38   :  { %306 = vmatpush3.msra.mxu1 %v156_v12 }
  0x39   :  { %307 = vmatprep.subr.mxu1 %v425_v0 }
  0x3a   :  { %308 = vmatpush3.msra.mxu1 %v155_v13 }
  0x3b   :  { %309 = vmatprep.subr.mxu1 %v425_v0 }
  0x3c   :  { %310 = vmatpush3.msra.mxu1 %v154_v14 }
  0x3d   :  { %311 = vmatprep.subr.mxu1 %v425_v0 }
  0x3e   :  { %312 = vmatpush3.msra.mxu1 %v153_v15 }
  0x3f   :  { %313 = vmatprep.subr.mxu1 %v425_v0 }
  0x40   :  { %314 = vmatpush3.msra.mxu1 %v152_v16 }
  0x41   :  { %315 = vmatprep.subr.mxu1 %v425_v0 }
  0x42   :  { %316 = vmatpush3.msra.mxu1 %v151_v17 }
  0x43   :  { %317 = vmatprep.subr.mxu1 %v425_v0 }
  0x44   :  { %318 = vmatpush3.msra.mxu1 %v150_v18 }
  0x45   :  { %319 = vmatprep.subr.mxu1 %v425_v0 }
  0x46   :  { %320 = vmatpush3.msra.mxu1 %v149_v19 }
  0xeb   :  { %v140_v21 = vpop.f32.mrf.mxu0 }
  0xec   :  { %v141_v22 = vadd.f32 %v259_v20, %v140_v21 }
  0xed   :  { %v288_v23 = vpop.f32.mrf.mxu0 }
  0xee   :  { %v145_v24 = vmul.f32 0.70710677, %v141_v22  ;;  %v144_v26 = vmul.f32 0.5, %v141_v22 }
  0xf0   :  { %332 = verf.f32 %v145_v24 }
  0xfd   :  { %v333_v25 = vpop.eup %332 }
  0xfe   :  { %v147_v27 = vadd.f32 1.0, %v333_v25 }
 0x100   :  { %v148_v28 = vmul.f32 %v147_v27, %v144_v26 }
 0x102   :  { %322 = vmatmul.mubr.f32.vlgmr.msra.gmra.mxu1 %v148_v28 }
 0x1c2   :  { %v238_v30 = vpop.f32.mrf.mxu1 }
 0x1c3   :  { %v239_v31 = vadd.f32 %v261_v29, %v238_v30 }
 0x1c4   :  { %v323_v32 = vpop.f32.mrf.mxu1 }
 0x1c5   :  { %242 = vst [vmem:[#allocation8] sm:$0xff] %v239_v31 }
 0x1c6   :  { %405 = shalt.err (!%p402_p5)
}
 0x1c7   :  { %252 = dma.vmem_to_hbm [thread:$0]  %s250_s12, 128, %s481_s5, [#allocation4]  }
 0x1c8   :  { %418 = dma.done.wait [#allocation4], 128  }
 0x1c9   :  { %419 = vsyncadd [#allocation4], 4294967168 }
 0x1ca   :  { %256 = vsyncpa [#allocation3], 1 }
 0x1cb   :  { %257 = vsyncpa [#allocation6], 1 }
 0x1cc   :  { %258 = vsyncpa [#allocation4], 1 }

// kernel: tpu_custom_call.1
= control target key start
LH: loop header
LB: loop body
LE: loop exit
PB: predicated region body
PF: predicated region fallthrough
CT: control target
= control target key end

     0   :  { %10 = vsyncpa [#allocation3], 0  ;;  %s476_s0 = inlined_call_operand.hbm [shape: f32[8,16], index: 0, kind: input, shape index: {}]   ;;  %s477_s1 = inlined_call_operand.hbm [shape: f32[16,128], index: 1, kind: input, shape index: {}]   ;;  %s478_s2 = inlined_call_operand.vmem [shape: f32[1,128], index: 2, kind: input, shape index: {}]   ;;  %s479_s3 = inlined_call_operand.hbm [shape: f32[128,128], index: 3, kind: input, shape index: {}]   ;;  %s480_s4 = inlined_call_operand.vmem [shape: f32[1,128], index: 4, kind: input, shape index: {}]   ;;  %s481_s5 = inlined_call_operand.hbm [shape: f32[8,128], index: 5, kind: output, shape index: {}]  }
   0x1   :  { %11 = vsyncpa [#allocation6], 0 }
   0x2   :  { %12 = vsyncpa [#allocation4], 0  ;;  %s420_s18 = smov [#allocation5]  }
   0x3   :  { %s28_s19 = sshll.u32 %s420_s18, 4  ;;  %s29_s19 = int_to_ptr.vmem [resolvable:$true] %s28_s19 }
   0x4   :  { %s342_s20 = scalar_lea.vmem %s29_s19, 256  ;;  %p347_p1 = scmp.lt.s32.totalorder %s29_s19, %s29_s19 }
   0x5   :  { %p343_p0 = scmp.ne.s32.totalorder %s29_s19, %s342_s20  ;;  %p348_p2 = scmp.lt.s32.totalorder %s342_s20, %s342_s20 }
   0x7   :  { %p349_p3 = por %p348_p2, %p347_p1 }
   0x9   :  { %p350_p4 = pnand %p349_p3, %p343_p0 }
   0xb   :  { %353 = shalt.err (!%p350_p4)
}
   0xc   :  { %s421_s21 = smov 128   ;;  %s422_s22 = smov 8  }
   0xd   :  { %34 = dma.hbm_to_vmem [thread:$0]  %s477_s1, 256, %s29_s19, [#allocation6], %s421_s21, %s421_s21, %s422_s22  }
   0xe   :  { %s423_s25 = smov [#allocation2]   ;;  %s424_s27 = smov [#allocation7]  }
   0xf   :  { %s19_s26 = sshll.u32 %s423_s25, 4  ;;  %s42_s28 = sshll.u32 %s424_s27, 4  ;;  %s20_s26 = int_to_ptr.vmem [resolvable:$true] %s19_s26  ;;  %s43_s28 = int_to_ptr.vmem [resolvable:$true] %s42_s28 }
  0x10   :  { %s362_s29 = scalar_lea.vmem %s20_s26, 128  ;;  %p367_p6 = scmp.lt.s32.totalorder %s20_s26, %s20_s26 }
  0x11   :  { %p363_p5 = scmp.ne.s32.totalorder %s20_s26, %s362_s29  ;;  %p368_p7 = scmp.lt.s32.totalorder %s362_s29, %s362_s29 }
  0x13   :  { %p369_p8 = por %p368_p7, %p367_p6 }
  0x15   :  { %p370_p9 = pnand %p369_p8, %p363_p5 }
  0x17   :  { %373 = shalt.err (!%p370_p9)
}
  0x18   :  { %22 = dma.hbm_to_vmem [thread:$0]  %s476_s0, 128, %s20_s26, [#allocation3]  }
  0x19   :  { %s382_s7 = scalar_lea.vmem %s43_s28, 2048  ;;  %p387_p11 = scmp.lt.s32.totalorder %s43_s28, %s43_s28 }
  0x1a   :  { %p383_p10 = scmp.ne.s32.totalorder %s43_s28, %s382_s7  ;;  %p388_p12 = scmp.lt.s32.totalorder %s382_s7, %s382_s7 }
  0x1c   :  { %p389_p13 = por %p388_p12, %p387_p11 }
  0x1e   :  { %p390_p0 = pnand %p389_p13, %p383_p10 }
  0x20   :  { %393 = shalt.err (!%p390_p0)
}
  0x21   :  { %48 = dma.hbm_to_vmem [thread:$0]  %s479_s3, 2048, %s43_s28, [#allocation6], %s421_s21, %s421_s21, %s422_s22  }
  0x22   :  { %414 = dma.done.wait [#allocation3], 128  }
  0x23   :  { %415 = vsyncadd [#allocation3], 4294967168 }
  0x24   :  { %416 = dma.done.wait [#allocation6], 2304  }
  0x25   :  { %417 = vsyncadd [#allocation6], 4294964992  ;;  %v425_v0 = vmov 0.0   ;;  %vm426_vm0 = vmmov 0   ;;  %v62_v1 = vld [vmem:[#allocation5 + $0x8] sm:$0xff]  ;;  %v61_v2 = vld [vmem:[#allocation5] sm:$0xff] }
  0x26   :  { %282 = vmatprep.subr.mxu0 %v425_v0  ;;  %286 = vmatprep.mubr.msk.f32.mxu0 %vm426_vm0, %v425_v0  ;;  %v60_v3 = vld [vmem:[#allocation2] sm:$0xff]  ;;  %vm70_vm1 = vcmask 130048   ;;  %v164_v4 = vld [vmem:[#allocation7 + $0x78] sm:$0xff]  ;;  %v163_v5 = vld [vmem:[#allocation7 + $0x70] sm:$0xff]  ;;  %s427_s11 = smov [#allocation8]  }
  0x27   :  { %289 = vmatprep.subr.mxu1 %v425_v0  ;;  %321 = vmatprep.mubr.msk.f32.mxu1 %vm426_vm0, %v425_v0  ;;  %v162_v6 = vld [vmem:[#allocation7 + $0x68] sm:$0xff]  ;;  %v161_v7 = vld [vmem:[#allocation7 + $0x60] sm:$0xff]  ;;  %v160_v8 = vld [vmem:[#allocation7 + $0x58] sm:$0xff]  ;;  %s249_s12 = sshll.u32 %s427_s11, 4  ;;  %s250_s12 = int_to_ptr.vmem [resolvable:$true] %s249_s12 }
  0x28   :  { %283 = vmatpush3.msra.mxu0 %v62_v1  ;;  %290 = vmatpush3.msra.mxu1 %v164_v4  ;;  %v159_v9 = vld [vmem:[#allocation7 + $0x50] sm:$0xff]  ;;  %v158_v10 = vld [vmem:[#allocation7 + $0x48] sm:$0xff]  ;;  %v157_v11 = vld [vmem:[#allocation7 + $0x40] sm:$0xff]  ;;  %p399_p2 = scmp.lt.s32.totalorder %s250_s12, %s250_s12 }
  0x29   :  { %284 = vmatprep.subr.mxu0 %v425_v0  ;;  %291 = vmatprep.subr.mxu1 %v425_v0  ;;  %v156_v12 = vld [vmem:[#allocation7 + $0x38] sm:$0xff]  ;;  %v155_v13 = vld [vmem:[#allocation7 + $0x30] sm:$0xff]  ;;  %v154_v14 = vld [vmem:[#allocation7 + $0x28] sm:$0xff] }
  0x2a   :  { %285 = vmatpush3.msra.mxu0 %v61_v2  ;;  %292 = vmatpush3.msra.mxu1 %v163_v5  ;;  %v153_v15 = vld [vmem:[#allocation7 + $0x20] sm:$0xff]  ;;  %v152_v16 = vld [vmem:[#allocation7 + $0x18] sm:$0xff]  ;;  %v151_v17 = vld [vmem:[#allocation7 + $0x10] sm:$0xff] }
  0x2b   :  { %287 = vmatmul.mubr.msk.f32.vlgmr.msra.gmra.mxu0 %vm70_vm1, %v60_v3  ;;  %293 = vmatprep.subr.mxu1 %v425_v0  ;;  %v150_v18 = vld [vmem:[#allocation7 + $0x8] sm:$0xff]  ;;  %v149_v19 = vld [vmem:[#allocation7] sm:$0xff] }
  0x2c   :  { %294 = vmatpush3.msra.mxu1 %v162_v6  ;;  %v259_v20 = vld [vmem:[%s478_s2] ss:$0 sm:$0xff]  ;;  %s394_s2 = scalar_lea.vmem %s250_s12, 128 }
  0x2d   :  { %295 = vmatprep.subr.mxu1 %v425_v0  ;;  %v261_v29 = vld [vmem:[%s480_s4] ss:$0 sm:$0xff]  ;;  %p395_p1 = scmp.ne.s32.totalorder %s250_s12, %s394_s2  ;;  %p400_p3 = scmp.lt.s32.totalorder %s394_s2, %s394_s2 }
  0x2e   :  { %296 = vmatpush3.msra.mxu1 %v161_v7 }
  0x2f   :  { %297 = vmatprep.subr.mxu1 %v425_v0  ;;  %p401_p4 = por %p400_p3, %p399_p2 }
  0x30   :  { %298 = vmatpush3.msra.mxu1 %v160_v8 }
  0x31   :  { %299 = vmatprep.subr.mxu1 %v425_v0  ;;  %p402_p5 = pnand %p401_p4, %p395_p1 }
  0x32   :  { %300 = vmatpush3.msra.mxu1 %v159_v9 }
  0x33   :  { %301 = vmatprep.subr.mxu1 %v425_v0 }
  0x34   :  { %302 = vmatpush3.msra.mxu1 %v158_v10 }
  0x35   :  { %303 = vmatprep.subr.mxu1 %v425_v0 }
  0x36   :  { %304 = vmatpush3.msra.mxu1 %v157_v11 }
  0x37   :  { %305 = vmatprep.subr.mxu1 %v425_v0 }
  0x38   :  { %306 = vmatpush3.msra.mxu1 %v156_v12 }
  0x39   :  { %307 = vmatprep.subr.mxu1 %v425_v0 }
  0x3a   :  { %308 = vmatpush3.msra.mxu1 %v155_v13 }
  0x3b   :  { %309 = vmatprep.subr.mxu1 %v425_v0 }
  0x3c   :  { %310 = vmatpush3.msra.mxu1 %v154_v14 }
  0x3d   :  { %311 = vmatprep.subr.mxu1 %v425_v0 }
  0x3e   :  { %312 = vmatpush3.msra.mxu1 %v153_v15 }
  0x3f   :  { %313 = vmatprep.subr.mxu1 %v425_v0 }
  0x40   :  { %314 = vmatpush3.msra.mxu1 %v152_v16 }
  0x41   :  { %315 = vmatprep.subr.mxu1 %v425_v0 }
  0x42   :  { %316 = vmatpush3.msra.mxu1 %v151_v17 }
  0x43   :  { %317 = vmatprep.subr.mxu1 %v425_v0 }
  0x44   :  { %318 = vmatpush3.msra.mxu1 %v150_v18 }
  0x45   :  { %319 = vmatprep.subr.mxu1 %v425_v0 }
  0x46   :  { %320 = vmatpush3.msra.mxu1 %v149_v19 }
  0xeb   :  { %v140_v21 = vpop.f32.mrf.mxu0 }
  0xec   :  { %v141_v22 = vadd.f32 %v259_v20, %v140_v21 }
  0xed   :  { %v288_v23 = vpop.f32.mrf.mxu0 }
  0xee   :  { %v145_v24 = vmul.f32 0.70710677, %v141_v22  ;;  %v144_v26 = vmul.f32 0.5, %v141_v22 }
  0xf0   :  { %332 = verf.f32 %v145_v24 }
  0xfd   :  { %v333_v25 = vpop.eup %332 }
  0xfe   :  { %v147_v27 = vadd.f32 1.0, %v333_v25 }
 0x100   :  { %v148_v28 = vmul.f32 %v147_v27, %v144_v26 }
 0x102   :  { %322 = vmatmul.mubr.f32.vlgmr.msra.gmra.mxu1 %v148_v28 }
 0x1c2   :  { %v238_v30 = vpop.f32.mrf.mxu1 }
 0x1c3   :  { %v239_v31 = vadd.f32 %v261_v29, %v238_v30 }
 0x1c4   :  { %v323_v32 = vpop.f32.mrf.mxu1 }
 0x1c5   :  { %242 = vst [vmem:[#allocation8] sm:$0xff] %v239_v31 }
 0x1c6   :  { %405 = shalt.err (!%p402_p5)
}
 0x1c7   :  { %252 = dma.vmem_to_hbm [thread:$0]  %s250_s12, 128, %s481_s5, [#allocation4]  }
 0x1c8   :  { %418 = dma.done.wait [#allocation4], 128  }
 0x1c9   :  { %419 = vsyncadd [#allocation4], 4294967168 }
 0x1ca   :  { %256 = vsyncpa [#allocation3], 1 }
 0x1cb   :  { %257 = vsyncpa [#allocation6], 1 }
 0x1cc   :  { %258 = vsyncpa [#allocation4], 1 }

</bundles_post_ra>
